<compile_context>
chip_gen: v7x
topology: tpu7x:2x2x1
jax: 0.10.0
libtpu: 0.0.40
codegen_flags: <defaults>
</compile_context>

<pallas_src>
import jax
import jax.numpy as jnp
from jax.experimental import pallas as pl
from jax.experimental.pallas import tpu as pltpu

TILE_B = 16384          # default max batch-tile width (review: 8192-32768)
_GRAIN = 512            # multiple of 128 (v5e MXU) and 256 (v6e/v7x MXU)


def _round_up(n, m):
    return ((n + m - 1) // m) * m


def _choose_tile_b(batch, tile_b_max):
    """Pick the batch-tile width.

    - Never (much) larger than the batch -> tiny batches keep a tiny tile.
    - For batches spanning >= 2 grains, target >= 2 grid tiles so the
      'parallel' batch axis can be sharded across both v7x TensorCores
      (no-op on single-core v5e/v6e).
    - Always a multiple of 512 so tiles are MXU/lane aligned on all gens.
    """
    padded = _round_up(batch, _GRAIN)
    if padded >= 2 * _GRAIN:
        target = _round_up((batch + 1) // 2, _GRAIN)   # ~half the batch
    else:
        target = padded
    return max(_GRAIN, min(tile_b_max, target))


def _mlp_kernel(xT_ref, w1t_ref, b1_ref, w2t_ref, b2_ref,
                w3t_ref, b3_ref, w4_ref, b4_ref, o_ref):
    xT = xT_ref[...]                      # (2, TB)  f32
    w1t = w1t_ref[...]                    # (H1, 2)  f32

    # fc1 (K=2): two VPU broadcast-FMAs; K=2 would waste whole MXU passes.
    h = (w1t[:, 0:1] * xT[0:1, :]
         + w1t[:, 1:2] * xT[1:2, :]
         + b1_ref[...])                   # (H1, TB) f32
    h = jnp.maximum(h, 0.0)

    # fc2: MXU matmul, M=H2, K=H1, N=TB (lane-dense N).  bf16 operands,
    # f32 accumulation; bias added in f32.
    h = jnp.dot(w2t_ref[...], h.astype(w2t_ref.dtype),
                preferred_element_type=jnp.float32) + b2_ref[...]
    h = jnp.maximum(h, 0.0)

    # fc3: MXU matmul, bf16 operands, f32 accumulation.
    h = jnp.dot(w3t_ref[...], h.astype(w3t_ref.dtype),
                preferred_element_type=jnp.float32) + b3_ref[...]
    h = jnp.maximum(h, 0.0)

    # fc4 (N_out=1): elementwise mul + sublane reduce (XLU), b4 folded in.
    out = jnp.sum(w4_ref[...] * h, axis=0, keepdims=True) + b4_ref[...]  # (1, TB)
    o_ref[...] = out.astype(o_ref.dtype)


def di_4layer_controller_pallas(x, params, tile_b=TILE_B, use_bf16_mxu=True,
                                vmem_limit_bytes=32 * 1024 * 1024):
    """x: (batch, 2); params = (w1, b1, w2, b2, w3, b3, w4, b4) with weights
    stored as (in, out) and biases as (1, out). Returns (batch, 1) float32."""
    w1, b1, w2, b2, w3, b3, w4, b4 = params
    batch = x.shape[0]

    tile_b = _choose_tile_b(batch, tile_b)
    num_tiles = pl.cdiv(batch, tile_b)
    padded = num_tiles * tile_b

    # Lane-dense transposed layout; pad batch to a multiple of tile_b.
    xT = x.T                                            # (2, batch)
    if padded != batch:
        xT = jnp.pad(xT, ((0, 0), (0, padded - batch)))

    mxu_dtype = jnp.bfloat16 if use_bf16_mxu else jnp.float32
    w1t = w1.T                                          # (H1, 2)  f32 (VPU path)
    w2t = w2.T.astype(mxu_dtype)                        # (H2, H1)
    w3t = w3.T.astype(mxu_dtype)                        # (H3, H2)
    b1c, b2c, b3c = b1.T, b2.T, b3.T                    # (Hk, 1)  f32
    # w4 stays (H3, 1) f32; b4 stays (1, 1) f32.

    def resident(shape):
        # Full-array block, constant index_map -> stays VMEM-resident.
        return pl.BlockSpec(shape, lambda i: (0, 0))

    out = pl.pallas_call(
        _mlp_kernel,
        out_shape=jax.ShapeDtypeStruct((1, padded), jnp.float32),
        grid=(num_tiles,),
        in_specs=[
            pl.BlockSpec((2, tile_b), lambda i: (0, i)),      # xT stream
            resident(w1t.shape), resident(b1c.shape),
            resident(w2t.shape), resident(b2c.shape),
            resident(w3t.shape), resident(b3c.shape),
            resident(w4.shape), resident(b4.shape),
        ],
        out_specs=pl.BlockSpec((1, tile_b), lambda i: (0, i)),
        compiler_params=pltpu.CompilerParams(
            dimension_semantics=("parallel",),                # 2 TCs on v7x
            vmem_limit_bytes=vmem_limit_bytes),
    )(xT, w1t, b1c, w2t, b2c, w3t, b3c, w4, b4)

    return out[:, :batch].T                                   # (batch, 1)


def init_params(key, neurons_per_layer):
    """Deterministic init mimicking PyTorch nn.Linear default (+-1/sqrt(fan_in))."""
    dims = [2] + list(neurons_per_layer) + [1]
    params = []
    for i in range(4):
        fan_in, fan_out = dims[i], dims[i + 1]
        key, kw, kb = jax.random.split(key, 3)
        bound = 1.0 / jnp.sqrt(jnp.float32(fan_in))
        w = jax.random.uniform(kw, (fan_in, fan_out), jnp.float32,
                               minval=-bound, maxval=bound)   # (in, out) == W.T
        b = jax.random.uniform(kb, (1, fan_out), jnp.float32,
                               minval=-bound, maxval=bound)
        params.extend([w, b])
    return tuple(params)


def reference_forward(x, params):
    w1, b1, w2, b2, w3, b3, w4, b4 = params
    h = jnp.maximum(x @ w1 + b1, 0.0)
    h = jnp.maximum(h @ w2 + b2, 0.0)
    h = jnp.maximum(h @ w3 + b3, 0.0)
    return h @ w4 + b4


if __name__ == "__main__":
    key = jax.random.PRNGKey(0)
    neurons_per_layer = [32, 32, 32]
    kx, kp = jax.random.split(key)

    batch = 8
    x = jax.random.normal(kx, (batch, 2), jnp.float32)
    params = init_params(kp, neurons_per_layer)

    out = di_4layer_controller_pallas(x, params)
    out = jax.block_until_ready(out)

    ref = reference_forward(x, params)
    assert out.shape == (batch, 1), out.shape
    # bf16 MXU operands (f32 accumulate) -> relaxed tolerance vs f32 reference.
    assert jnp.allclose(out, ref, atol=2e-2, rtol=2e-2), (out, ref)

    # Also sanity-check the exact-f32 path.
    out_f32 = jax.block_until_ready(
        di_4layer_controller_pallas(x, params, use_bf16_mxu=False))
    assert jnp.allclose(out_f32, ref, atol=1e-5, rtol=1e-5), (out_f32, ref)

    print("KERNEL_OK")
</pallas_src>

<mosaic_0001>
module attributes {stable_mosaic.version = 11 : i64} {
  func.func @_mlp_kernel(%arg0: i32, %arg1: memref<2x512xf32, #tpu.memory_space<vmem>>, %arg2: memref<32x2xf32, #tpu.memory_space<vmem>>, %arg3: memref<32x1xf32, #tpu.memory_space<vmem>>, %arg4: memref<32x32xbf16, #tpu.memory_space<vmem>>, %arg5: memref<32x1xf32, #tpu.memory_space<vmem>>, %arg6: memref<32x32xbf16, #tpu.memory_space<vmem>>, %arg7: memref<32x1xf32, #tpu.memory_space<vmem>>, %arg8: memref<32x1xf32, #tpu.memory_space<vmem>>, %arg9: memref<1x1xf32, #tpu.memory_space<vmem>>, %arg10: memref<1x512xf32, #tpu.memory_space<vmem>>) attributes {dimension_semantics = [#tpu.dimension_semantics<parallel>], iteration_bounds = array<i64: 1>, scalar_prefetch = 0 : i64, scratch_operands = 0 : i64, tpu.core_type = #tpu.core_type<tc>, window_params = [{transform_indices = @transform_0, window_bounds = array<i64: 2, 512>}, {pipeline_mode = #tpu.pipeline_mode<synchronous>, transform_indices = @transform_1, window_bounds = array<i64: 32, 2>}, {pipeline_mode = #tpu.pipeline_mode<synchronous>, transform_indices = @transform_2, window_bounds = array<i64: 32, 1>}, {pipeline_mode = #tpu.pipeline_mode<synchronous>, transform_indices = @transform_3, window_bounds = array<i64: 32, 32>}, {pipeline_mode = #tpu.pipeline_mode<synchronous>, transform_indices = @transform_4, window_bounds = array<i64: 32, 1>}, {pipeline_mode = #tpu.pipeline_mode<synchronous>, transform_indices = @transform_5, window_bounds = array<i64: 32, 32>}, {pipeline_mode = #tpu.pipeline_mode<synchronous>, transform_indices = @transform_6, window_bounds = array<i64: 32, 1>}, {pipeline_mode = #tpu.pipeline_mode<synchronous>, transform_indices = @transform_7, window_bounds = array<i64: 32, 1>}, {pipeline_mode = #tpu.pipeline_mode<synchronous>, transform_indices = @transform_8, window_bounds = array<i64: 1, 1>}, {transform_indices = @transform_9, window_bounds = array<i64: 1, 512>}]} {
    %c0 = arith.constant 0 : index
    %c0_0 = arith.constant 0 : index
    %0 = vector.load %arg1[%c0, %c0_0] : memref<2x512xf32, #tpu.memory_space<vmem>>, vector<2x512xf32>
    %c0_1 = arith.constant 0 : index
    %c0_2 = arith.constant 0 : index
    %1 = vector.load %arg2[%c0_1, %c0_2] : memref<32x2xf32, #tpu.memory_space<vmem>>, vector<32x2xf32>
    %2 = vector.extract_strided_slice %1 {offsets = [0, 0], sizes = [32, 1], strides = [1, 1]} : vector<32x2xf32> to vector<32x1xf32>
    %3 = vector.extract_strided_slice %0 {offsets = [0, 0], sizes = [1, 512], strides = [1, 1]} : vector<2x512xf32> to vector<1x512xf32>
    %4 = vector.broadcast %2 : vector<32x1xf32> to vector<32x512xf32>
    %5 = vector.broadcast %3 : vector<1x512xf32> to vector<32x512xf32>
    %6 = arith.mulf %4, %5 : vector<32x512xf32>
    %7 = vector.extract_strided_slice %1 {offsets = [0, 1], sizes = [32, 1], strides = [1, 1]} : vector<32x2xf32> to vector<32x1xf32>
    %8 = vector.extract_strided_slice %0 {offsets = [1, 0], sizes = [1, 512], strides = [1, 1]} : vector<2x512xf32> to vector<1x512xf32>
    %9 = vector.broadcast %7 : vector<32x1xf32> to vector<32x512xf32>
    %10 = vector.broadcast %8 : vector<1x512xf32> to vector<32x512xf32>
    %11 = arith.mulf %9, %10 : vector<32x512xf32>
    %12 = arith.addf %6, %11 : vector<32x512xf32>
    %c0_3 = arith.constant 0 : index
    %c0_4 = arith.constant 0 : index
    %13 = vector.load %arg3[%c0_3, %c0_4] : memref<32x1xf32, #tpu.memory_space<vmem>>, vector<32x1xf32>
    %14 = vector.broadcast %13 : vector<32x1xf32> to vector<32x512xf32>
    %15 = arith.addf %12, %14 : vector<32x512xf32>
    %cst = arith.constant 0.000000e+00 : f32
    %16 = vector.broadcast %cst : f32 to vector<32x512xf32>
    %17 = arith.maximumf %15, %16 : vector<32x512xf32>
    %c0_5 = arith.constant 0 : index
    %c0_6 = arith.constant 0 : index
    %18 = vector.load %arg4[%c0_5, %c0_6] : memref<32x32xbf16, #tpu.memory_space<vmem>>, vector<32x32xbf16>
    %19 = arith.truncf %17 : vector<32x512xf32> to vector<32x512xbf16>
    %cst_7 = arith.constant dense<0.000000e+00> : vector<32x512xf32>
    %20 = tpu.matmul %18, %19, %cst_7 {dimension_numbers = #tpu.dot_dimension_numbers<[1], [0], [0], [1], [0, 0, 1, 1], [], []>} : vector<32x32xbf16>, vector<32x512xbf16>, vector<32x512xf32> -> vector<32x512xf32>
    %c0_8 = arith.constant 0 : index
    %c0_9 = arith.constant 0 : index
    %21 = vector.load %arg5[%c0_8, %c0_9] : memref<32x1xf32, #tpu.memory_space<vmem>>, vector<32x1xf32>
    %22 = vector.broadcast %21 : vector<32x1xf32> to vector<32x512xf32>
    %23 = arith.addf %20, %22 : vector<32x512xf32>
    %cst_10 = arith.constant 0.000000e+00 : f32
    %24 = vector.broadcast %cst_10 : f32 to vector<32x512xf32>
    %25 = arith.maximumf %23, %24 : vector<32x512xf32>
    %c0_11 = arith.constant 0 : index
    %c0_12 = arith.constant 0 : index
    %26 = vector.load %arg6[%c0_11, %c0_12] : memref<32x32xbf16, #tpu.memory_space<vmem>>, vector<32x32xbf16>
    %27 = arith.truncf %25 : vector<32x512xf32> to vector<32x512xbf16>
    %cst_13 = arith.constant dense<0.000000e+00> : vector<32x512xf32>
    %28 = tpu.matmul %26, %27, %cst_13 {dimension_numbers = #tpu.dot_dimension_numbers<[1], [0], [0], [1], [0, 0, 1, 1], [], []>} : vector<32x32xbf16>, vector<32x512xbf16>, vector<32x512xf32> -> vector<32x512xf32>
    %c0_14 = arith.constant 0 : index
    %c0_15 = arith.constant 0 : index
    %29 = vector.load %arg7[%c0_14, %c0_15] : memref<32x1xf32, #tpu.memory_space<vmem>>, vector<32x1xf32>
    %30 = vector.broadcast %29 : vector<32x1xf32> to vector<32x512xf32>
    %31 = arith.addf %28, %30 : vector<32x512xf32>
    %cst_16 = arith.constant 0.000000e+00 : f32
    %32 = vector.broadcast %cst_16 : f32 to vector<32x512xf32>
    %33 = arith.maximumf %31, %32 : vector<32x512xf32>
    %c0_17 = arith.constant 0 : index
    %c0_18 = arith.constant 0 : index
    %34 = vector.load %arg8[%c0_17, %c0_18] : memref<32x1xf32, #tpu.memory_space<vmem>>, vector<32x1xf32>
    %35 = vector.broadcast %34 : vector<32x1xf32> to vector<32x512xf32>
    %36 = arith.mulf %35, %33 : vector<32x512xf32>
    %cst_19 = arith.constant dense<0.000000e+00> : vector<512xf32>
    %37 = vector.multi_reduction <add>, %36, %cst_19 [0] : vector<32x512xf32> to vector<512xf32>
    %38 = vector.shape_cast %37 : vector<512xf32> to vector<1x512xf32>
    %c0_20 = arith.constant 0 : index
    %c0_21 = arith.constant 0 : index
    %39 = vector.load %arg9[%c0_20, %c0_21] : memref<1x1xf32, #tpu.memory_space<vmem>>, vector<1x1xf32>
    %40 = vector.broadcast %39 : vector<1x1xf32> to vector<1x512xf32>
    %41 = arith.addf %38, %40 : vector<1x512xf32>
    %c0_22 = arith.constant 0 : index
    %c0_23 = arith.constant 0 : index
    %42 = vector.load %arg10[%c0_22, %c0_23] : memref<1x512xf32, #tpu.memory_space<vmem>>, vector<1x512xf32>
    tpu.vector_store %arg10[%c0_22, %c0_23], %41 {strides = array<i32>} : memref<1x512xf32, #tpu.memory_space<vmem>>, vector<1x512xf32>,
    return
  }
  func.func @transform_0(%arg0: i32) -> (i32, i32) {
    %c0_i32 = arith.constant 0 : i32
    %c0_i32_0 = arith.constant 0 : i32
    return %c0_i32, %arg0 : i32, i32
  }
  func.func @transform_1(%arg0: i32) -> (i32, i32) {
    %c0_i32 = arith.constant 0 : i32
    %c0_i32_0 = arith.constant 0 : i32
    %c0_i32_1 = arith.constant 0 : i32
    return %c0_i32, %c0_i32_0 : i32, i32
  }
  func.func @transform_2(%arg0: i32) -> (i32, i32) {
    %c0_i32 = arith.constant 0 : i32
    %c0_i32_0 = arith.constant 0 : i32
    %c0_i32_1 = arith.constant 0 : i32
    return %c0_i32, %c0_i32_0 : i32, i32
  }
  func.func @transform_3(%arg0: i32) -> (i32, i32) {
    %c0_i32 = arith.constant 0 : i32
    %c0_i32_0 = arith.constant 0 : i32
    %c0_i32_1 = arith.constant 0 : i32
    return %c0_i32, %c0_i32_0 : i32, i32
  }
  func.func @transform_4(%arg0: i32) -> (i32, i32) {
    %c0_i32 = arith.constant 0 : i32
    %c0_i32_0 = arith.constant 0 : i32
    %c0_i32_1 = arith.constant 0 : i32
    return %c0_i32, %c0_i32_0 : i32, i32
  }
  func.func @transform_5(%arg0: i32) -> (i32, i32) {
    %c0_i32 = arith.constant 0 : i32
    %c0_i32_0 = arith.constant 0 : i32
    %c0_i32_1 = arith.constant 0 : i32
    return %c0_i32, %c0_i32_0 : i32, i32
  }
  func.func @transform_6(%arg0: i32) -> (i32, i32) {
    %c0_i32 = arith.constant 0 : i32
    %c0_i32_0 = arith.constant 0 : i32
    %c0_i32_1 = arith.constant 0 : i32
    return %c0_i32, %c0_i32_0 : i32, i32
  }
  func.func @transform_7(%arg0: i32) -> (i32, i32) {
    %c0_i32 = arith.constant 0 : i32
    %c0_i32_0 = arith.constant 0 : i32
    %c0_i32_1 = arith.constant 0 : i32
    return %c0_i32, %c0_i32_0 : i32, i32
  }
  func.func @transform_8(%arg0: i32) -> (i32, i32) {
    %c0_i32 = arith.constant 0 : i32
    %c0_i32_0 = arith.constant 0 : i32
    %c0_i32_1 = arith.constant 0 : i32
    return %c0_i32, %c0_i32_0 : i32, i32
  }
  func.func @transform_9(%arg0: i32) -> (i32, i32) {
    %c0_i32 = arith.constant 0 : i32
    %c0_i32_0 = arith.constant 0 : i32
    return %c0_i32, %arg0 : i32, i32
  }
}

</mosaic_0001>

<bundles_post_ra>
// kernel: tpu_custom_call.1
= control target key start
LH: loop header
LB: loop body
LE: loop exit
PB: predicated region body
PF: predicated region fallthrough
CT: control target
= control target key end

     0   :  { %s975_s0 = inlined_call_operand.vmem [shape: f32[2,512], index: 0, kind: input, shape index: {}]   ;;  %s976_s1 = inlined_call_operand.vmem [shape: f32[32,2], index: 1, kind: input, shape index: {}]   ;;  %s977_s2 = inlined_call_operand.vmem [shape: f32[32,1], index: 2, kind: input, shape index: {}]   ;;  %s978_s3 = inlined_call_operand.vmem [shape: bf16[32,32], index: 3, kind: input, shape index: {}]   ;;  %s979_s4 = inlined_call_operand.vmem [shape: f32[32,1], index: 4, kind: input, shape index: {}]   ;;  %s980_s5 = inlined_call_operand.vmem [shape: bf16[32,32], index: 5, kind: input, shape index: {}]   ;;  %s981_s6 = inlined_call_operand.vmem [shape: f32[32,1], index: 6, kind: input, shape index: {}]   ;;  %s982_s7 = inlined_call_operand.vmem [shape: f32[32,1], index: 7, kind: input, shape index: {}]   ;;  %s983_s8 = inlined_call_operand.<no memory space> [shape: f32[1,1], index: 8, kind: input, shape index: {}]   ;;  %s984_s9 = inlined_call_operand.hbm [shape: f32[1,512], index: 9, kind: output, shape index: {}]  }
   0x1   :  { %v14_v0 = vstv %s983_s8 }
   0x2   :  { %15 = vst [vmem:[#allocation2] sm:$0x1] %v14_v0 }
   0x3   :  { %v39_v1 = vld [vmem:[%s976_s1 + $0x10] sm:$0xff]  ;;  %v37_v2 = vld [vmem:[%s976_s1] sm:$0xff]  ;;  %v791_v3 = vmov 1   ;;  %v38_v4 = vld [vmem:[%s976_s1 + $0x8] sm:$0xff]  ;;  %v792_v5 = vmov 0  }
   0x4   :  { %759 = vset.pattern.permute.xlu0 %v791_v3  ;;  %757 = vset.pattern.permute.xlu1 %v791_v3  ;;  %v40_v6 = vld [vmem:[%s976_s1 + $0x18] sm:$0xff] }
   0x5   :  { %123 = vperm.xlu0 %759, %v39_v1   ;;  %115 = vperm.xlu1 %757, %v37_v2  }
   0x6   :  { %339 = vmatprep.mubr.bf16.mxu0 %v792_v5  ;;  %392 = vmatprep.mubr.bf16.mxu1 %v792_v5 }
   0x9   :  { %760 = vset.pattern.permute.xlu0 %v792_v5  ;;  %119 = vperm.xlu1 %757, %v38_v4  }
   0xa   :  { %43 = vperm.xlu0 %760, %v37_v2  }
   0xd   :  { %758 = vset.pattern.permute.xlu1 %v792_v5 }
   0xe   :  { %16 = vsyncpa [#allocation4], 0  ;;  %48 = vperm.xlu0 %760, %v38_v4   ;;  %58 = vperm.xlu1 %758, %v40_v6   ;;  %v199_v7 = vld [vmem:[%s977_s2 + $0x8] sm:$0xff]  ;;  %v198_v8 = vld [vmem:[%s977_s2] sm:$0xff]  ;;  %v62_v24 = vlaneseq  ;;  %vm300_vm0 = vcmask 261120  }
   0xf   :  { %v266_v9 = vld [vmem:[%s979_s4] sm:$0xff]  ;;  %v200_v10 = vld [vmem:[%s977_s2 + $0x10] sm:$0xff]  ;;  %v201_v12 = vld [vmem:[%s977_s2 + $0x18] sm:$0xff] }
  0x10   :  { %v268_v11 = vld [vmem:[%s979_s4 + $0x10] sm:$0xff]  ;;  %v441_v13 = vld [vmem:[%s981_s6] sm:$0xff]  ;;  %v267_v14 = vld [vmem:[%s979_s4 + $0x8] sm:$0xff]  ;;  %v914_v25 = vshrl.u32 %v62_v24, 7  ;;  %vm724_vm1 = vcmp.lt.s32.totalorder %v62_v24, 512 }
  0x11   :  { %v443_v15 = vld [vmem:[%s981_s6 + $0x10] sm:$0xff]  ;;  %v269_v16 = vld [vmem:[%s979_s4 + $0x18] sm:$0xff]  ;;  %v603_v17 = vld [vmem:[%s982_s7] sm:$0xff] }
  0x12   :  { %53 = vperm.xlu0 %760, %v39_v1   ;;  %761 = vset.pattern.permute.xlu1 %v791_v3  ;;  %v442_v18 = vld [vmem:[%s981_s6 + $0x8] sm:$0xff]  ;;  %v605_v19 = vld [vmem:[%s982_s7 + $0x10] sm:$0xff]  ;;  %v444_v20 = vld [vmem:[%s981_s6 + $0x18] sm:$0xff]  ;;  %v132_v26 = vsub.s32 1, %v914_v25  ;;  %v136_v27 = vsub.s32 3, %v914_v25  ;;  %v140_v28 = vsub.s32 5, %v914_v25 }
  0x13   :  { %127 = vperm.xlu1 %761, %v40_v6   ;;  %v679_v21 = vld [vmem:[#allocation2] sm:$0x1]  ;;  %v604_v22 = vld [vmem:[%s982_s7 + $0x8] sm:$0xff]  ;;  %v606_v23 = vld [vmem:[%s982_s7 + $0x18] sm:$0xff]  ;;  %v144_v29 = vsub.s32 7, %v914_v25  ;;  %v924_v31 = vsub.s32 0, %v914_v25 }
  0x14   :  { %v36_v30 = vld [vmem:[%s975_s0] sm:$0xff]  ;;  %v68_v32 = vsub.s32 2, %v914_v25  ;;  %v72_v33 = vsub.s32 4, %v914_v25  ;;  %v76_v34 = vsub.s32 6, %v914_v25 }
  0x15   :  { %v133_v37 = vrot.slane %v36_v30, %v132_v26  ;;  %v137_v38 = vrot.slane %v36_v30, %v136_v27  ;;  %v141_v39 = vrot.slane %v36_v30, %v140_v28  ;;  %v145_v40 = vrot.slane %v36_v30, %v144_v29 }
  0x16   :  { %209 = vperm.xlu0 %760, %v199_v7   ;;  %v65_v41 = vrot.slane %v36_v30, %v924_v31  ;;  %v69_v42 = vrot.slane %v36_v30, %v68_v32  ;;  %v73_v43 = vrot.slane %v36_v30, %v72_v33  ;;  %v77_v44 = vrot.slane %v36_v30, %v76_v34 }
  0x17   :  { %762 = vset.pattern.permute.xlu1 %v792_v5  ;;  %v153_v46 = vrot.slane %v133_v37, %v132_v26  ;;  %v157_v47 = vrot.slane %v137_v38, %v132_v26  ;;  %v161_v48 = vrot.slane %v141_v39, %v132_v26  ;;  %v165_v49 = vrot.slane %v145_v40, %v132_v26 }
  0x18   :  { %204 = vperm.xlu1 %762, %v198_v8   ;;  %v85_v51 = vrot.slane %v65_v41, %v924_v31  ;;  %v89_v52 = vrot.slane %v69_v42, %v924_v31  ;;  %v93_v53 = vrot.slane %v73_v43, %v924_v31  ;;  %v97_v54 = vrot.slane %v77_v44, %v924_v31 }
  0x1a   :  { %272 = vperm.xlu0 %760, %v266_v9  }
  0x1c   :  { %214 = vperm.xlu1 %762, %v200_v10  }
  0x1e   :  { %282 = vperm.xlu0 %760, %v268_v11  }
  0x20   :  { %219 = vperm.xlu1 %762, %v201_v12  }
  0x22   :  { %447 = vperm.xlu0 %760, %v441_v13  }
  0x24   :  { %277 = vperm.xlu1 %762, %v267_v14  }
  0x26   :  { %457 = vperm.xlu0 %760, %v443_v15  }
  0x28   :  { %287 = vperm.xlu1 %762, %v269_v16  }
  0x2a   :  { %609 = vperm.xlu0 %760, %v603_v17  }
  0x2c   :  { %452 = vperm.xlu1 %762, %v442_v18  }
  0x2e   :  { %619 = vperm.xlu0 %760, %v605_v19  }
  0x30   :  { %462 = vperm.xlu1 %762, %v444_v20  }
  0x32   :  { %682 = vperm.xlu0 %760, %v679_v21  }
  0x34   :  { %614 = vperm.xlu1 %762, %v604_v22  }
  0x38   :  { %624 = vperm.xlu1 %762, %v606_v23  }
  0x84   :  { %v116_v35 = vpop.permute.xlu1 %115  ;;  %v124_v36 = vpop.permute.xlu0 %123 }
  0x85   :  { %v166_v55 = vmul.f32 %v153_v46, %v116_v35  ;;  %v167_v56 = vmul.f32 %v157_v47, %v116_v35  ;;  %v168_v57 = vmul.f32 %v161_v48, %v116_v35  ;;  %v169_v58 = vmul.f32 %v165_v49, %v116_v35 }
  0x86   :  { %v174_v1 = vmul.f32 %v153_v46, %v124_v36  ;;  %v175_v2 = vmul.f32 %v157_v47, %v124_v36  ;;  %v176_v3 = vmul.f32 %v161_v48, %v124_v36  ;;  %v177_v4 = vmul.f32 %v165_v49, %v124_v36 }
  0x88   :  { %v120_v45 = vpop.permute.xlu1 %119 }
  0x89   :  { %v44_v50 = vpop.permute.xlu0 %43  ;;  %v170_v6 = vmul.f32 %v153_v46, %v120_v45  ;;  %v171_v7 = vmul.f32 %v157_v47, %v120_v45  ;;  %v172_v10 = vmul.f32 %v161_v48, %v120_v45  ;;  %v173_v11 = vmul.f32 %v165_v49, %v120_v45 }
  0x8a   :  { %v98_v61 = vmul.f32 %v85_v51, %v44_v50  ;;  %v99_v62 = vmul.f32 %v89_v52, %v44_v50  ;;  %v100_v63 = vmul.f32 %v93_v53, %v44_v50  ;;  %v101_v0 = vmul.f32 %v97_v54, %v44_v50 }
  0x8c   :  { %v183_v16 = vadd.f32 %v167_v56, %v99_v62  ;;  %v185_v17 = vadd.f32 %v169_v58, %v101_v0  ;;  %v182_v18 = vadd.f32 %v166_v55, %v98_v61  ;;  %v184_v19 = vadd.f32 %v168_v57, %v100_v63 }
  0x8d   :  { %v49_v59 = vpop.permute.xlu0 %48  ;;  %v59_v60 = vpop.permute.xlu1 %58 }
  0x8e   :  { %v103_v8 = vmul.f32 %v89_v52, %v49_v59  ;;  %v105_v9 = vmul.f32 %v97_v54, %v49_v59  ;;  %v102_v12 = vmul.f32 %v85_v51, %v49_v59  ;;  %v104_v13 = vmul.f32 %v93_v53, %v49_v59 }
  0x8f   :  { %v110_v20 = vmul.f32 %v85_v51, %v59_v60  ;;  %v111_v21 = vmul.f32 %v89_v52, %v59_v60  ;;  %v112_v22 = vmul.f32 %v93_v53, %v59_v60  ;;  %v113_v23 = vmul.f32 %v97_v54, %v59_v60 }
  0x90   :  { %v187_v28 = vadd.f32 %v171_v7, %v103_v8  ;;  %v189_v29 = vadd.f32 %v173_v11, %v105_v9  ;;  %v186_v34 = vadd.f32 %v170_v6, %v102_v12  ;;  %v188_v35 = vadd.f32 %v172_v10, %v104_v13 }
  0x91   :  { %v54_v14 = vpop.permute.xlu0 %53 }
  0x92   :  { %v128_v15 = vpop.permute.xlu1 %127  ;;  %v106_v26 = vmul.f32 %v85_v51, %v54_v14  ;;  %v107_v27 = vmul.f32 %v89_v52, %v54_v14  ;;  %v108_v30 = vmul.f32 %v93_v53, %v54_v14  ;;  %v109_v32 = vmul.f32 %v97_v54, %v54_v14 }
  0x93   :  { %v178_v36 = vmul.f32 %v153_v46, %v128_v15  ;;  %v179_v37 = vmul.f32 %v157_v47, %v128_v15  ;;  %v180_v40 = vmul.f32 %v161_v48, %v128_v15  ;;  %v181_v41 = vmul.f32 %v165_v49, %v128_v15 }
  0x94   :  { %v190_v45 = vadd.f32 %v174_v1, %v106_v26  ;;  %v191_v50 = vadd.f32 %v175_v2, %v107_v27  ;;  %v192_v55 = vadd.f32 %v176_v3, %v108_v30  ;;  %v193_v56 = vadd.f32 %v177_v4, %v109_v32  ;;  %v763_v30 = vld [vmem:[%s978_s3] sm:$0xff]   ;;  %v764_v32 = vld [vmem:[%s978_s3 + $0x8] sm:$0xff]  }
  0x95   :  { %v210_v33 = vpop.permute.xlu0 %209  ;;  %v194_v4 = vadd.f32 %v178_v36, %v110_v20  ;;  %v195_v8 = vadd.f32 %v179_v37, %v111_v21  ;;  %v196_v9 = vadd.f32 %v180_v40, %v112_v22  ;;  %v197_v10 = vadd.f32 %v181_v41, %v113_v23 }
  0x96   :  { %v227_v38 = vadd.f32 %v210_v33, %v187_v28  ;;  %v229_v39 = vadd.f32 %v210_v33, %v189_v29  ;;  %v226_v43 = vadd.f32 %v210_v33, %v186_v34  ;;  %v228_v44 = vadd.f32 %v210_v33, %v188_v35 }
  0x97   :  { %v205_v42 = vpop.permute.xlu1 %204 }
  0x98   :  { %v223_v51 = vadd.f32 %v205_v42, %v183_v16  ;;  %v225_v52 = vadd.f32 %v205_v42, %v185_v17  ;;  %v222_v53 = vadd.f32 %v205_v42, %v182_v18  ;;  %v224_v54 = vadd.f32 %v205_v42, %v184_v19 }
  0x99   :  { %v243_v58 = vmax.f32 %v227_v38, 0.0  ;;  %v245_v46 = vmax.f32 %v229_v39, 0.0  ;;  %v242_v61 = vmax.f32 %v226_v43, 0.0  ;;  %v244_v49 = vmax.f32 %v228_v44, 0.0  ;;  %v273_v33 = vpop.permute.xlu0 %272 }
  0x9a   :  { %v239_v57 = vmax.f32 %v223_v51, 0.0  ;;  %v241_v59 = vmax.f32 %v225_v52, 0.0  ;;  %v238_v60 = vmax.f32 %v222_v53, 0.0  ;;  %v240_v48 = vmax.f32 %v224_v54, 0.0 }
  0x9b   :  { %v215_v47 = vpop.permute.xlu1 %214 }
  0x9c   :  { %v230_v62 = vadd.f32 %v215_v47, %v190_v45  ;;  %v231_v63 = vadd.f32 %v215_v47, %v191_v50  ;;  %v232_v0 = vadd.f32 %v215_v47, %v192_v55  ;;  %v233_v1 = vadd.f32 %v215_v47, %v193_v56 }
  0x9d   :  { %v259_v2 = vpack.c.bf16 %v243_v58, %v239_v57  ;;  %v261_v6 = vpack.c.bf16 %v245_v46, %v241_v59  ;;  %v258_v7 = vpack.c.bf16 %v242_v61, %v238_v60  ;;  %v260_v3 = vpack.c.bf16 %v244_v49, %v240_v48  ;;  %v283_v61 = vpop.permute.xlu0 %282 }
  0x9e   :  { %v247_v16 = vmax.f32 %v231_v63, 0.0  ;;  %v249_v17 = vmax.f32 %v233_v1, 0.0  ;;  %v246_v18 = vmax.f32 %v230_v62, 0.0  ;;  %v248_v19 = vmax.f32 %v232_v0, 0.0 }
  0x9f   :  { %307 = vmatprep.subr.bf16.mxu0 %v259_v2  ;;  %360 = vmatprep.subr.bf16.mxu1 %v261_v6  ;;  %v220_v11 = vpop.permute.xlu1 %219 }
  0xa0   :  { %v234_v12 = vadd.f32 %v220_v11, %v194_v4  ;;  %v235_v13 = vadd.f32 %v220_v11, %v195_v8  ;;  %v236_v14 = vadd.f32 %v220_v11, %v196_v9  ;;  %v237_v15 = vadd.f32 %v220_v11, %v197_v10  ;;  %308 = vmatpush1.bf16.msra.mxu0 %v258_v7 }
  0xa1   :  { %361 = vmatpush1.bf16.msra.mxu1 %v260_v3 }
  0xa2   :  { %v251_v26 = vmax.f32 %v235_v13, 0.0  ;;  %v253_v27 = vmax.f32 %v237_v15, 0.0  ;;  %v250_v28 = vmax.f32 %v234_v12, 0.0  ;;  %v252_v20 = vmax.f32 %v236_v14, 0.0 }
  0xa3   :  { %v278_v34 = vpop.permute.xlu1 %277 }
  0xa4   :  { %v263_v21 = vpack.c.bf16 %v251_v26, %v247_v16  ;;  %v265_v22 = vpack.c.bf16 %v253_v27, %v249_v17  ;;  %v262_v23 = vpack.c.bf16 %v250_v28, %v246_v18  ;;  %v264_v29 = vpack.c.bf16 %v252_v20, %v248_v19 }
  0xa6   :  { %309 = vmatprep.subr.bf16.mxu0 %v263_v21  ;;  %362 = vmatprep.subr.bf16.mxu1 %v265_v22 }
  0xa7   :  { %310 = vmatpush1.bf16.msra.mxu0 %v262_v23  ;;  %363 = vmatpush1.bf16.msra.mxu1 %v264_v29  ;;  %v288_v48 = vpop.permute.xlu1 %287 }
  0xaa   :  { %743 = vmatmul.mubr.msk.bf16.vlgmr.msra.gmra.mrb[0].mxu0 %vm300_vm0, %v763_v30  ;;  %745 = vmatmul.mubr.msk.bf16.vlgmr.msra.gmra.mrb[0].mxu1 %vm300_vm0, %v763_v30 }
  0xab   :  { %349 = vmatprep.mubr.bf16.mxu0 %v792_v5  ;;  %402 = vmatprep.mubr.bf16.mxu1 %v792_v5 }
  0xb2   :  { %744 = vmatmul.mubr.msk.bf16.gmra.mrb[4].mxu0 %vm300_vm0, %v764_v32  ;;  %746 = vmatmul.mubr.msk.bf16.gmra.mrb[4].mxu1 %vm300_vm0, %v764_v32 }
  0xb3   :  { %513 = vmatprep.mubr.bf16.mxu0 %v792_v5  ;;  %566 = vmatprep.mubr.bf16.mxu1 %v792_v5 }
 0x17d   :  { %v341_v35 = vpop.f32.mrb[0].mxu0  ;;  %v394_v36 = vpop.f32.mrb[0].mxu1 }
 0x17e   :  { %v342_v37 = vadd.f32 %v341_v35, %v273_v33  ;;  %v395_v38 = vadd.f32 %v394_v36, %v273_v33  ;;  %v343_v39 = vpop.f32.mrb[1].mxu0  ;;  %v396_v40 = vpop.f32.mrb[1].mxu1 }
 0x17f   :  { %v344_v41 = vadd.f32 %v343_v39, %v273_v33  ;;  %v397_v42 = vadd.f32 %v396_v40, %v273_v33  ;;  %v345_v43 = vpop.f32.mrb[2].mxu0  ;;  %v398_v44 = vpop.f32.mrb[2].mxu1  ;;  %v765_v33 = vld [vmem:[%s980_s5] sm:$0xff]  }
 0x180   :  { %v346_v45 = vadd.f32 %v345_v43, %v278_v34  ;;  %v399_v50 = vadd.f32 %v398_v44, %v278_v34  ;;  %v347_v51 = vpop.f32.mrb[3].mxu0  ;;  %v400_v52 = vpop.f32.mrb[3].mxu1  ;;  %v413_v53 = vmax.f32 %v342_v37, 0.0  ;;  %v415_v54 = vmax.f32 %v395_v38, 0.0 }
 0x181   :  { %v348_v55 = vadd.f32 %v347_v51, %v278_v34  ;;  %v401_v56 = vadd.f32 %v400_v52, %v278_v34  ;;  %v414_v59 = vmax.f32 %v344_v41, 0.0  ;;  %v416_v46 = vmax.f32 %v397_v42, 0.0  ;;  %v766_v34 = vld [vmem:[%s980_s5 + $0x8] sm:$0xff]   ;;  %v448_v35 = vpop.permute.xlu0 %447  ;;  %v453_v36 = vpop.permute.xlu1 %452  ;;  %s794_s5 = smov [#allocation3]  }
 0x182   :  { %v417_v57 = vmax.f32 %v346_v45, 0.0  ;;  %v419_v58 = vmax.f32 %v399_v50, 0.0  ;;  %s733_s30 = sshll.u32 %s794_s5, 4  ;;  %s734_s30 = int_to_ptr.vmem [resolvable:$true] %s733_s30 }
 0x183   :  { %v418_v47 = vmax.f32 %v348_v55, 0.0  ;;  %v420_v60 = vmax.f32 %v401_v56, 0.0  ;;  %s767_s10 = scalar_lea.vmem %s734_s30, 64  ;;  %p772_p1 = scmp.lt.s32.totalorder %s734_s30, %s734_s30 }
 0x184   :  { %v433_v49 = vpack.c.bf16 %v417_v57, %v413_v53  ;;  %v435_v62 = vpack.c.bf16 %v419_v58, %v415_v54  ;;  %p768_p0 = scmp.ne.s32.totalorder %s734_s30, %s767_s10  ;;  %p773_p2 = scmp.lt.s32.totalorder %s767_s10, %s767_s10 }
 0x185   :  { %v434_v63 = vpack.c.bf16 %v418_v47, %v414_v59  ;;  %v436_v0 = vpack.c.bf16 %v420_v60, %v416_v46  ;;  %v351_v1 = vpop.f32.mrb[4].mxu0  ;;  %v404_v2 = vpop.f32.mrb[4].mxu1 }
 0x186   :  { %v352_v6 = vadd.f32 %v351_v1, %v283_v61  ;;  %v405_v7 = vadd.f32 %v404_v2, %v283_v61  ;;  %v353_v3 = vpop.f32.mrb[5].mxu0  ;;  %v406_v4 = vpop.f32.mrb[5].mxu1  ;;  %p774_p3 = por %p773_p2, %p772_p1 }
 0x187   :  { %v354_v8 = vadd.f32 %v353_v3, %v283_v61  ;;  %v407_v9 = vadd.f32 %v406_v4, %v283_v61  ;;  %v355_v10 = vpop.f32.mrb[6].mxu0  ;;  %v408_v11 = vpop.f32.mrb[6].mxu1  ;;  %481 = vmatprep.subr.bf16.mxu0 %v434_v63  ;;  %534 = vmatprep.subr.bf16.mxu1 %v436_v0 }
 0x188   :  { %v356_v12 = vadd.f32 %v355_v10, %v288_v48  ;;  %v409_v13 = vadd.f32 %v408_v11, %v288_v48  ;;  %v357_v14 = vpop.f32.mrb[7].mxu0  ;;  %v410_v15 = vpop.f32.mrb[7].mxu1  ;;  %482 = vmatpush1.bf16.msra.mxu0 %v433_v49  ;;  %535 = vmatpush1.bf16.msra.mxu1 %v435_v62  ;;  %v421_v18 = vmax.f32 %v352_v6, 0.0  ;;  %v423_v19 = vmax.f32 %v405_v7, 0.0  ;;  %p775_p4 = pnand %p774_p3, %p768_p0 }
 0x189   :  { %v358_v16 = vadd.f32 %v357_v14, %v288_v48  ;;  %v411_v17 = vadd.f32 %v410_v15, %v288_v48  ;;  %v422_v28 = vmax.f32 %v354_v8, 0.0  ;;  %v424_v20 = vmax.f32 %v407_v9, 0.0  ;;  %v458_v37 = vpop.permute.xlu0 %457  ;;  %v463_v38 = vpop.permute.xlu1 %462 }
 0x18a   :  { %v425_v26 = vmax.f32 %v356_v12, 0.0  ;;  %v427_v27 = vmax.f32 %v409_v13, 0.0 }
 0x18b   :  { %v426_v21 = vmax.f32 %v358_v16, 0.0  ;;  %v428_v22 = vmax.f32 %v411_v17, 0.0 }
 0x18c   :  { %v437_v23 = vpack.c.bf16 %v425_v26, %v421_v18  ;;  %v439_v29 = vpack.c.bf16 %v427_v27, %v423_v19 }
 0x18d   :  { %v438_v30 = vpack.c.bf16 %v426_v21, %v422_v28  ;;  %v440_v32 = vpack.c.bf16 %v428_v22, %v424_v20  ;;  %v610_v48 = vpop.permute.xlu0 %609  ;;  %v615_v49 = vpop.permute.xlu1 %614 }
 0x18f   :  { %483 = vmatprep.subr.bf16.mxu0 %v438_v30  ;;  %536 = vmatprep.subr.bf16.mxu1 %v440_v32 }
 0x190   :  { %484 = vmatpush1.bf16.msra.mxu0 %v437_v23  ;;  %537 = vmatpush1.bf16.msra.mxu1 %v439_v29 }
 0x191   :  { %v620_v32 = vpop.permute.xlu0 %619 }
 0x193   :  { %749 = vmatmul.mubr.msk.bf16.vlgmr.msra.gmra.mrb[8].mxu0 %vm300_vm0, %v765_v33  ;;  %751 = vmatmul.mubr.msk.bf16.vlgmr.msra.gmra.mrb[8].mxu1 %vm300_vm0, %v765_v33 }
 0x194   :  { %523 = vmatprep.mubr.bf16.mxu0 %v792_v5  ;;  %576 = vmatprep.mubr.bf16.mxu1 %v792_v5 }
 0x19b   :  { %750 = vmatmul.mubr.msk.bf16.gmra.mrb[12].mxu0 %vm300_vm0, %v766_v34  ;;  %752 = vmatmul.mubr.msk.bf16.gmra.mrb[12].mxu1 %vm300_vm0, %v766_v34 }
 0x266   :  { %v515_v39 = vpop.f32.mrb[8].mxu0  ;;  %v568_v40 = vpop.f32.mrb[8].mxu1 }
 0x267   :  { %v516_v41 = vadd.f32 %v515_v39, %v448_v35  ;;  %v569_v42 = vadd.f32 %v568_v40, %v448_v35  ;;  %v517_v43 = vpop.f32.mrb[9].mxu0  ;;  %v570_v44 = vpop.f32.mrb[9].mxu1 }
 0x268   :  { %v518_v45 = vadd.f32 %v517_v43, %v448_v35  ;;  %v571_v5 = vadd.f32 %v570_v44, %v448_v35  ;;  %v519_v50 = vpop.f32.mrb[10].mxu0  ;;  %v572_v51 = vpop.f32.mrb[10].mxu1 }
 0x269   :  { %v587_v52 = vmax.f32 %v516_v41, 0.0  ;;  %v589_v55 = vmax.f32 %v569_v42, 0.0  ;;  %v520_v56 = vadd.f32 %v519_v50, %v453_v36  ;;  %v573_v53 = vadd.f32 %v572_v51, %v453_v36  ;;  %v521_v54 = vpop.f32.mrb[11].mxu0  ;;  %v574_v57 = vpop.f32.mrb[11].mxu1 }
 0x26a   :  { %v588_v58 = vmax.f32 %v518_v45, 0.0  ;;  %v590_v59 = vmax.f32 %v571_v5, 0.0  ;;  %v522_v46 = vadd.f32 %v521_v54, %v453_v36  ;;  %v575_v47 = vadd.f32 %v574_v57, %v453_v36  ;;  %v625_v43 = vpop.permute.xlu1 %624 }
 0x26b   :  { %v591_v60 = vmax.f32 %v520_v56, 0.0  ;;  %v593_v61 = vmax.f32 %v573_v53, 0.0  ;;  %v627_v0 = vmul.f32 %v610_v48, %v587_v52  ;;  %v629_v1 = vmul.f32 %v610_v48, %v589_v55 }
 0x26c   :  { %v592_v62 = vmax.f32 %v522_v46, 0.0  ;;  %v594_v63 = vmax.f32 %v575_v47, 0.0  ;;  %v628_v7 = vmul.f32 %v610_v48, %v588_v58  ;;  %v630_v3 = vmul.f32 %v610_v48, %v590_v59 }
 0x26d   :  { %v631_v2 = vmul.f32 %v615_v49, %v591_v60  ;;  %v633_v6 = vmul.f32 %v615_v49, %v593_v61 }
 0x26e   :  { %v632_v4 = vmul.f32 %v615_v49, %v592_v62  ;;  %v634_v8 = vmul.f32 %v615_v49, %v594_v63  ;;  %v525_v9 = vpop.f32.mrb[12].mxu0  ;;  %v578_v10 = vpop.f32.mrb[12].mxu1 }
 0x26f   :  { %v643_v11 = vadd.f32 %v631_v2, %v627_v0  ;;  %v661_v12 = vadd.f32 %v633_v6, %v629_v1  ;;  %v526_v13 = vadd.f32 %v525_v9, %v458_v37  ;;  %v579_v14 = vadd.f32 %v578_v10, %v458_v37  ;;  %v527_v15 = vpop.f32.mrb[13].mxu0  ;;  %v580_v16 = vpop.f32.mrb[13].mxu1 }
 0x270   :  { %v652_v17 = vadd.f32 %v632_v4, %v628_v7  ;;  %v670_v18 = vadd.f32 %v634_v8, %v630_v3  ;;  %v528_v19 = vadd.f32 %v527_v15, %v458_v37  ;;  %v581_v26 = vadd.f32 %v580_v16, %v458_v37  ;;  %v529_v27 = vpop.f32.mrb[14].mxu0  ;;  %v582_v28 = vpop.f32.mrb[14].mxu1 }
 0x271   :  { %v595_v20 = vmax.f32 %v526_v13, 0.0  ;;  %v597_v21 = vmax.f32 %v579_v14, 0.0  ;;  %v530_v22 = vadd.f32 %v529_v27, %v463_v38  ;;  %v583_v23 = vadd.f32 %v582_v28, %v463_v38  ;;  %v531_v29 = vpop.f32.mrb[15].mxu0  ;;  %v584_v30 = vpop.f32.mrb[15].mxu1 }
 0x272   :  { %v596_v33 = vmax.f32 %v528_v19, 0.0  ;;  %v598_v34 = vmax.f32 %v581_v26, 0.0  ;;  %v532_v35 = vadd.f32 %v531_v29, %v463_v38  ;;  %v585_v36 = vadd.f32 %v584_v30, %v463_v38  ;;  %v683_v10 = vpop.permute.xlu0 %682 }
 0x273   :  { %v635_v39 = vmul.f32 %v620_v32, %v595_v20  ;;  %v637_v40 = vmul.f32 %v620_v32, %v597_v21  ;;  %v599_v41 = vmax.f32 %v530_v22, 0.0  ;;  %v601_v42 = vmax.f32 %v583_v23, 0.0 }
 0x274   :  { %v636_v44 = vmul.f32 %v620_v32, %v596_v33  ;;  %v638_v37 = vmul.f32 %v620_v32, %v598_v34  ;;  %v600_v45 = vmax.f32 %v532_v35, 0.0  ;;  %v602_v5 = vmax.f32 %v585_v36, 0.0 }
 0x275   :  { %v644_v50 = vadd.f32 %v643_v11, %v635_v39  ;;  %v662_v51 = vadd.f32 %v661_v12, %v637_v40  ;;  %v639_v52 = vmul.f32 %v625_v43, %v599_v41  ;;  %v641_v55 = vmul.f32 %v625_v43, %v601_v42 }
 0x276   :  { %v653_v56 = vadd.f32 %v652_v17, %v636_v44  ;;  %v671_v53 = vadd.f32 %v670_v18, %v638_v37  ;;  %v640_v54 = vmul.f32 %v625_v43, %v600_v45  ;;  %v642_v57 = vmul.f32 %v625_v43, %v602_v5 }
 0x277   :  { %v645_v58 = vadd.f32 %v644_v50, %v639_v52  ;;  %v663_v59 = vadd.f32 %v662_v51, %v641_v55  ;;  %v793_v3 = vmov 1966171168   ;;  %v688_v18 = vrot.slane %v683_v10, %v924_v31 }
 0x278   :  { %v654_v38 = vadd.f32 %v653_v56, %v640_v54  ;;  %v672_v46 = vadd.f32 %v671_v53, %v642_v57  ;;  %v700_v4 = vunpack.c.l.s4 %v793_v3 }
 0x279   :  { %v646_v47 = vrot.slane %v645_v58, 4  ;;  %v664_v60 = vrot.slane %v663_v59, 4 }
 0x27a   :  { %v655_v61 = vrot.slane %v654_v38, 4  ;;  %v673_v48 = vrot.slane %v672_v46, 4  ;;  %v701_v17 = vunpack.c.0.s8 %v700_v4 }
 0x27b   :  { %v647_v49 = vadd.f32 %v646_v47, %v645_v58  ;;  %v665_v62 = vadd.f32 %v664_v60, %v663_v59 }
 0x27c   :  { %v656_v63 = vadd.f32 %v655_v61, %v654_v38  ;;  %v674_v0 = vadd.f32 %v673_v48, %v672_v46  ;;  %v704_v29 = vsub.s32 %v701_v17, %v914_v25 }
 0x27d   :  { %v648_v1 = vrot.slane %v647_v49, 2  ;;  %v666_v2 = vrot.slane %v665_v62, 2 }
 0x27e   :  { %v657_v6 = vrot.slane %v656_v63, 2  ;;  %v675_v7 = vrot.slane %v674_v0, 2 }
 0x27f   :  { %v649_v8 = vadd.f32 %v648_v1, %v647_v49  ;;  %v667_v9 = vadd.f32 %v666_v2, %v665_v62 }
 0x280   :  { %v658_v11 = vadd.f32 %v657_v6, %v656_v63  ;;  %v676_v12 = vadd.f32 %v675_v7, %v674_v0 }
 0x281   :  { %v650_v13 = vrot.slane %v649_v8, 1  ;;  %v668_v14 = vrot.slane %v667_v9, 1 }
 0x282   :  { %v659_v15 = vrot.slane %v658_v11, 1  ;;  %v677_v16 = vrot.slane %v676_v12, 1 }
 0x283   :  { %v651_v19 = vadd.f32 %v650_v13, %v649_v8  ;;  %v669_v26 = vadd.f32 %v668_v14, %v667_v9 }
 0x284   :  { %v660_v27 = vadd.f32 %v659_v15, %v658_v11  ;;  %v678_v28 = vadd.f32 %v677_v16, %v676_v12 }
 0x285   :  { %v689_v20 = vadd.f32 %v688_v18, %v651_v19  ;;  %v691_v21 = vadd.f32 %v688_v18, %v669_v26 }
 0x286   :  { %v690_v22 = vadd.f32 %v688_v18, %v660_v27  ;;  %v692_v23 = vadd.f32 %v688_v18, %v678_v28 }
 0x288   :  { %v697_v30 = vcombine.low %v689_v20, %v690_v22  ;;  %v698_v32 = vcombine.low %v691_v21, %v692_v23 }
 0x28a   :  { %v705_v33 = vrot.slane %v697_v30, %v704_v29  ;;  %v712_v34 = vrot.slane %v698_v32, %v704_v29 }
 0x28c   :  { %v713_v35 = vcombine.low %v705_v33, %v712_v34 }
 0x28e   :  { %v720_v31 = vrot.slane %v713_v35, %v704_v29 }
 0x290   :  { %726 = vst.msk [vmem:[#allocation3] sm:$0xf] %vm724_vm1, %v720_v31 }
 0x291   :  { %778 = shalt.err (!%p775_p4)
}
 0x292   :  { %s779_s13 = scalar_lea.hbm %s984_s9, 64 }
 0x293   :  { %p780_p5 = scmp.ne.s32.totalorder %s984_s9, %s779_s13  ;;  %p783_p6 = scmp.lt.u32.totalorder %s779_s13, %s984_s9 }
 0x295   :  { %p785_p7 = pnand %p783_p6, %p780_p5 }
 0x297   :  { %788 = shalt.err (!%p785_p7)
}
 0x298   :  { %736 = dma.vmem_to_hbm [thread:$0]  %s734_s30, 64, %s984_s9, [#allocation4]  }
 0x299   :  { %789 = dma.done.wait [#allocation4], 64  }
 0x29a   :  { %790 = vsyncadd [#allocation4], 4294967232 }
 0x29b   :  { %740 = vsyncpa [#allocation4], 1 }

</bundles_post_ra>
